<compile_context>
chip_gen: v7x
topology: tpu7x:2x2x1
jax: 0.10.0
libtpu: 0.0.40
codegen_flags: <defaults>
</compile_context>

<pallas_src>
import functools

import jax
import jax.numpy as jnp
from jax.experimental import pallas as pl
from jax.experimental.pallas import tpu as pltpu

ROW_TILE = 512          # rows per block for the projection kernel (HBM-bound)
Q_TILE = 128            # queries per block for the deformable-attention core


@functools.lru_cache(maxsize=None)
def _vmem_limit_bytes():
    """Generation-aware scoped-VMEM request (never 100% of physical VMEM)."""
    cap = None
    try:
        cap = getattr(pltpu.get_tpu_info(), "vmem_capacity_bytes", None)
    except Exception:
        cap = None
    if not cap:
        cap = 128 * 1024 * 1024
    if cap <= 64 * 1024 * 1024:        # v7x: 64 MiB per TensorCore
        return 48 * 1024 * 1024
    return 96 * 1024 * 1024            # v5e / v6e: 128 MiB physical


def _row_tile(m, target):
    """Largest hardware-friendly row tile; keep >=2 grid steps when cheap (v7x has
    2 TensorCores and pipelining needs >1 step).  Halves only stay sublane-aligned."""
    if m <= target:
        if m >= 16 and m % 16 == 0:
            return m // 2
        return m
    return target


# ----------------------------------------------------------------------------
# Kernel 1: fused input projections
#   value  = src @ Wv + bv                      (stored bf16: matmul operand only)
#   off_aw = (src + pos) @ [W_off | W_aw] + b   (stored f32: softmax / bilinear glue)
# ----------------------------------------------------------------------------
def _proj_kernel(src_ref, pos_ref, wv_ref, bv_ref, woa_ref, boa_ref,
                 val_ref, oa_ref):
    src = src_ref[...]
    q = src + pos_ref[...]
    val = jnp.dot(src.astype(wv_ref.dtype), wv_ref[...],
                  preferred_element_type=jnp.float32) + bv_ref[...]
    val_ref[...] = val.astype(val_ref.dtype)
    oa_ref[...] = jnp.dot(q.astype(woa_ref.dtype), woa_ref[...],
                          preferred_element_type=jnp.float32) + boa_ref[...]


def fused_projections(src2, pos2, p):
    M, D = src2.shape
    Doa = p["w_offaw"].shape[1]
    tm = _row_tile(M, ROW_TILE)
    grid = (pl.cdiv(M, tm),)
    return pl.pallas_call(
        _proj_kernel,
        grid=grid,
        in_specs=[
            pl.BlockSpec((tm, D), lambda i: (i, 0)),
            pl.BlockSpec((tm, D), lambda i: (i, 0)),
            pl.BlockSpec((D, D), lambda i: (0, 0)),
            pl.BlockSpec((1, D), lambda i: (0, 0)),
            pl.BlockSpec((D, Doa), lambda i: (0, 0)),
            pl.BlockSpec((1, Doa), lambda i: (0, 0)),
        ],
        out_specs=[
            pl.BlockSpec((tm, D), lambda i: (i, 0)),
            pl.BlockSpec((tm, Doa), lambda i: (i, 0)),
        ],
        out_shape=[
            jax.ShapeDtypeStruct((M, D), jnp.bfloat16),
            jax.ShapeDtypeStruct((M, Doa), jnp.float32),
        ],
        compiler_params=pltpu.CompilerParams(
            dimension_semantics=("parallel",),
            vmem_limit_bytes=_vmem_limit_bytes()),
    )(src2, pos2, p["w_value"], p["b_value"], p["w_offaw"], p["b_offaw"])


# ----------------------------------------------------------------------------
# Kernel 2: deformable-attention core (per-level one-hot scatter + MXU matmul),
#           fused with out-proj + residual + LN1 + FFN + residual + LN2.
#   val : (Len_in, D) bf16       idx/w : (TQ, H*C) int32 / f32 (level-major per head)
#   src : (TQ, D) f32 residual   out   : (TQ, D) f32   (final layer output)
# TODO(synk): no general in-kernel TPU gather -> bilinear gather is a select-accumulate
#             against each level's positions, then an MXU matmul with that level's
#             value slice.
# ----------------------------------------------------------------------------
def _msda_fused_kernel(val_ref, idx_ref, w_ref, src_ref,
                       wo_ref, bo_ref, g1_ref, be1_ref,
                       w1_ref, b1_ref, w2_ref, b2_ref, g2_ref, be2_ref,
                       o_ref, *, n_heads, head_dim, corners_per_level,
                       level_sizes, level_starts, eps=1e-5):
    tq = idx_ref.shape[0]
    n_levels = len(level_sizes)
    corners = n_levels * corners_per_level          # per head

    head_outs = []
    for h in range(n_heads):
        out_h = jnp.zeros((tq, head_dim), jnp.float32)
        base_h = h * corners
        for l in range(n_levels):
            len_l = level_sizes[l]
            start_l = level_starts[l]
            base = base_h + l * corners_per_level
            # absolute flat positions covered by this level
            pos = jax.lax.broadcasted_iota(jnp.int32, (1, len_l), 1) + start_l
            # per-corner 2-D accumulation: no 3-D temporary, single (tq, len_l) agg live
            agg = jnp.zeros((tq, len_l), jnp.float32)
            for c in range(corners_per_level):
                col = base + c
                idx_c = idx_ref[:, col:col + 1]          # (tq, 1) int32
                w_c = w_ref[:, col:col + 1]              # (tq, 1) f32 (0 if OOB)
                agg = agg + jnp.where(idx_c == pos, w_c, 0.0)
            # gather realized as matmul against this level's value slice (f32 agg
            # operand; MXU has slack, keeps weight precision)
            v_l = val_ref[start_l:start_l + len_l,
                          h * head_dim:(h + 1) * head_dim].astype(jnp.float32)
            out_h = out_h + jnp.dot(agg, v_l, preferred_element_type=jnp.float32)
        head_outs.append(out_h)
    attn = jnp.concatenate(head_outs, axis=-1)           # (tq, D), lane-dense

    # ---- output projection + residual + LayerNorm1 (dropout1 = identity) ----
    y = jnp.dot(attn.astype(wo_ref.dtype), wo_ref[...],
                preferred_element_type=jnp.float32) + bo_ref[...]
    s = src_ref[...] + y
    mu = jnp.mean(s, axis=-1, keepdims=True)
    var = jnp.mean(jnp.square(s - mu), axis=-1, keepdims=True)
    s1 = (s - mu) * jax.lax.rsqrt(var + eps) * g1_ref[...] + be1_ref[...]

    # ---- FFN (linear1 -> relu -> linear2) + residual + LayerNorm2 ----
    hdd = jnp.maximum(
        jnp.dot(s1.astype(w1_ref.dtype), w1_ref[...],
                preferred_element_type=jnp.float32) + b1_ref[...], 0.0)
    y2 = jnp.dot(hdd.astype(w2_ref.dtype), w2_ref[...],
                 preferred_element_type=jnp.float32) + b2_ref[...]
    s2 = s1 + y2
    mu2 = jnp.mean(s2, axis=-1, keepdims=True)
    var2 = jnp.mean(jnp.square(s2 - mu2), axis=-1, keepdims=True)
    o_ref[...] = ((s2 - mu2) * jax.lax.rsqrt(var2 + eps) * g2_ref[...]
                  + be2_ref[...]).astype(o_ref.dtype)


def msda_attention_ffn(value, corner_idx, corner_w, src, p, *,
                       n_heads, head_dim, n_points,
                       spatial_shapes, level_start_index):
    N, Len_in, D = value.shape
    _, Lq, HC = corner_idx.shape
    Fd = p["w1"].shape[1]
    tq = _row_tile(Lq, Q_TILE)
    grid = (N, pl.cdiv(Lq, tq))
    level_sizes = tuple(int(h) * int(w) for (h, w) in spatial_shapes)
    level_starts = tuple(int(s) for s in level_start_index)
    kernel = functools.partial(
        _msda_fused_kernel, n_heads=n_heads, head_dim=head_dim,
        corners_per_level=4 * n_points,
        level_sizes=level_sizes, level_starts=level_starts)
    const = lambda b, qt: (0, 0)
    return pl.pallas_call(
        kernel,
        grid=grid,
        in_specs=[
            pl.BlockSpec((None, Len_in, D), lambda b, qt: (b, 0, 0)),   # value (bf16)
            pl.BlockSpec((None, tq, HC), lambda b, qt: (b, qt, 0)),     # corner idx
            pl.BlockSpec((None, tq, HC), lambda b, qt: (b, qt, 0)),     # corner w
            pl.BlockSpec((None, tq, D), lambda b, qt: (b, qt, 0)),      # src residual
            pl.BlockSpec((D, D), const),    # w_out
            pl.BlockSpec((1, D), const),    # b_out
            pl.BlockSpec((1, D), const),    # ln1_g
            pl.BlockSpec((1, D), const),    # ln1_b
            pl.BlockSpec((D, Fd), const),   # w1
            pl.BlockSpec((1, Fd), const),   # b1
            pl.BlockSpec((Fd, D), const),   # w2
            pl.BlockSpec((1, D), const),    # b2
            pl.BlockSpec((1, D), const),    # ln2_g
            pl.BlockSpec((1, D), const),    # ln2_b
        ],
        out_specs=pl.BlockSpec((None, tq, D), lambda b, qt: (b, qt, 0)),
        out_shape=jax.ShapeDtypeStruct((N, Lq, D), jnp.float32),
        compiler_params=pltpu.CompilerParams(
            dimension_semantics=("parallel", "parallel"),
            vmem_limit_bytes=_vmem_limit_bytes()),
    )(value, corner_idx, corner_w, src,
      p["w_out"], p["b_out"], p["ln1_g"], p["ln1_b"],
      p["w1"], p["b1"], p["w2"], p["b2"], p["ln2_g"], p["ln2_b"])


# ----------------------------------------------------------------------------
# Glue (plain JAX): bilinear corner indices/weights, softmax, reshapes
# ----------------------------------------------------------------------------
def build_corners(sampling_locations, attn_weights, spatial_shapes, level_start_index):
    """Normalized sampling locations -> flat gather indices + combined weights.

    Matches F.grid_sample(mode='bilinear', padding_mode='zeros', align_corners=False).
    Corners are LEVEL-MAJOR along the last axis (contiguous 4*P chunk per level) so the
    kernel's per-level decomposition gets contiguous lane slices.
    sampling_locations: (N, Lq, H, L, P, 2)   attn_weights: (N, Lq, H, L, P)
    returns corner_idx, corner_w: (N, Lq, H, C)  with C = L * P * 4
    """
    per_level_idx, per_level_w = [], []
    L = len(spatial_shapes)
    for l in range(L):
        H_l, W_l = spatial_shapes[l]
        start = level_start_index[l]
        loc = sampling_locations[:, :, :, l]          # (N, Lq, H, P, 2)
        aw = attn_weights[:, :, :, l]                 # (N, Lq, H, P)
        ix = loc[..., 0] * W_l - 0.5
        iy = loc[..., 1] * H_l - 0.5
        ix0 = jnp.floor(ix)
        iy0 = jnp.floor(iy)
        ix1 = ix0 + 1.0
        iy1 = iy0 + 1.0
        wx1 = ix - ix0
        wx0 = 1.0 - wx1
        wy1 = iy - iy0
        wy0 = 1.0 - wy1
        lvl_idx, lvl_w = [], []
        for xx, yy, ww in ((ix0, iy0, wx0 * wy0), (ix1, iy0, wx1 * wy0),
                           (ix0, iy1, wx0 * wy1), (ix1, iy1, wx1 * wy1)):
            valid = (xx >= 0) & (xx <= W_l - 1) & (yy >= 0) & (yy <= H_l - 1)
            xi = jnp.clip(xx, 0, W_l - 1).astype(jnp.int32)
            yi = jnp.clip(yy, 0, H_l - 1).astype(jnp.int32)
            flat = start + yi * W_l + xi              # stays inside this level's range
            lvl_idx.append(flat)
            lvl_w.append(jnp.where(valid, ww, 0.0) * aw)
        li = jnp.stack(lvl_idx, axis=-1)              # (N, Lq, H, P, 4)
        lw = jnp.stack(lvl_w, axis=-1)
        Nn, Lqq, Hh, P, _ = li.shape
        per_level_idx.append(li.reshape(Nn, Lqq, Hh, P * 4))
        per_level_w.append(lw.reshape(Nn, Lqq, Hh, P * 4))
    corner_idx = jnp.concatenate(per_level_idx, axis=-1)   # (N, Lq, H, L*P*4)
    corner_w = jnp.concatenate(per_level_w, axis=-1)
    return corner_idx, corner_w


def prepare_params(raw):
    """Fuse offset/attention-weight projections and pre-cast matmul weights to bf16."""
    bf = jnp.bfloat16
    return dict(
        w_value=raw["w_value"].astype(bf),
        b_value=raw["b_value"].reshape(1, -1),
        w_offaw=jnp.concatenate([raw["w_off"], raw["w_aw"]], axis=1).astype(bf),
        b_offaw=jnp.concatenate([raw["b_off"], raw["b_aw"]]).reshape(1, -1),
        w_out=raw["w_out"].astype(bf),
        b_out=raw["b_out"].reshape(1, -1),
        ln1_g=raw["ln1_g"].reshape(1, -1),
        ln1_b=raw["ln1_b"].reshape(1, -1),
        w1=raw["w1"].astype(bf),
        b1=raw["b1"].reshape(1, -1),
        w2=raw["w2"].astype(bf),
        b2=raw["b2"].reshape(1, -1),
        ln2_g=raw["ln2_g"].reshape(1, -1),
        ln2_b=raw["ln2_b"].reshape(1, -1),
    )


def encoder_layer_forward(params, src, pos, reference_points,
                          spatial_shapes, level_start_index, padding_mask=None,
                          *, n_heads, n_levels, n_points):
    N, Lq, D = src.shape
    # Encoder layer: queries and value come from the same src, so Lq == Len_in.
    assert reference_points.shape[1] == Lq, "encoder expects Len_q == Len_in"
    Len_in = Lq
    hd = D // n_heads

    M = N * Lq
    src2 = src.reshape(M, D)
    pos2 = (pos if pos is not None else jnp.zeros_like(src)).reshape(M, D)

    # ---- fused projections: value + [offsets | attention logits] ----
    value, off_aw = fused_projections(src2, pos2, params)
    value = value.reshape(N, Len_in, D)                       # bf16, no transposes
    if padding_mask is not None:
        value = jnp.where(padding_mask[..., None], jnp.zeros((), value.dtype), value)

    n_off = n_heads * n_levels * n_points * 2
    off = off_aw[:, :n_off].reshape(N, Lq, n_heads, n_levels, n_points, 2)
    aw = off_aw[:, n_off:].reshape(N, Lq, n_heads, n_levels * n_points)
    aw = jax.nn.softmax(aw, axis=-1).reshape(N, Lq, n_heads, n_levels, n_points)

    # offset_normalizer = (W_l, H_l) per level
    wh = jnp.array([[w, h] for (h, w) in spatial_shapes], dtype=jnp.float32)
    sampling_locations = (reference_points[:, :, None, :, None, :]
                          + off / wh[None, None, None, :, None, :])

    corner_idx, corner_w = build_corners(sampling_locations, aw,
                                         spatial_shapes, level_start_index)
    C = corner_idx.shape[-1]
    corner_idx = corner_idx.reshape(N, Lq, n_heads * C)      # head-major, level-major
    corner_w = corner_w.reshape(N, Lq, n_heads * C)

    # ---- deformable attention + out-proj + LN1 + FFN + LN2, all fused ----
    out = msda_attention_ffn(value, corner_idx, corner_w, src.astype(jnp.float32),
                             params, n_heads=n_heads, head_dim=hd,
                             n_points=n_points, spatial_shapes=spatial_shapes,
                             level_start_index=level_start_index)
    return out


# ----------------------------------------------------------------------------
# Pure-JAX reference for correctness checking
# ----------------------------------------------------------------------------
def reference_forward(raw, src, pos, reference_points,
                      spatial_shapes, level_start_index, padding_mask=None,
                      *, n_heads, n_levels, n_points):
    N, Lq, D = src.shape
    hd = D // n_heads
    q = src if pos is None else src + pos
    value = src @ raw["w_value"] + raw["b_value"]
    if padding_mask is not None:
        value = jnp.where(padding_mask[..., None], 0.0, value)
    off = (q @ raw["w_off"] + raw["b_off"]).reshape(
        N, Lq, n_heads, n_levels, n_points, 2)
    aw = (q @ raw["w_aw"] + raw["b_aw"]).reshape(
        N, Lq, n_heads, n_levels * n_points)
    aw = jax.nn.softmax(aw, -1).reshape(N, Lq, n_heads, n_levels, n_points)
    wh = jnp.array([[w, h] for (h, w) in spatial_shapes], jnp.float32)
    sl = reference_points[:, :, None, :, None, :] + off / wh[None, None, None, :, None, :]
    cidx, cw = build_corners(sl, aw, spatial_shapes, level_start_index)   # (N,Lq,H,C)

    vh = value.reshape(N, Lq, n_heads, hd).transpose(0, 2, 1, 3)          # (N,H,Len,hd)
    cidx_t = cidx.transpose(0, 2, 1, 3)
    cw_t = cw.transpose(0, 2, 1, 3)

    def agg(v, i, w):        # (Len_in, hd), (Lq, C), (Lq, C)
        g = v[i]             # (Lq, C, hd)
        return jnp.einsum("qc,qcd->qd", w, g)

    attn = jax.vmap(jax.vmap(agg))(vh, cidx_t, cw_t)                      # (N,H,Lq,hd)
    attn = attn.transpose(0, 2, 1, 3).reshape(N, Lq, D)
    attn = attn @ raw["w_out"] + raw["b_out"]

    def ln(x, g, b):
        mu = x.mean(-1, keepdims=True)
        var = ((x - mu) ** 2).mean(-1, keepdims=True)
        return (x - mu) / jnp.sqrt(var + 1e-5) * g + b

    s = ln(src + attn, raw["ln1_g"], raw["ln1_b"])
    h = jax.nn.relu(s @ raw["w1"] + raw["b1"])
    s2 = h @ raw["w2"] + raw["b2"]
    return ln(s + s2, raw["ln2_g"], raw["ln2_b"])


# ----------------------------------------------------------------------------
if __name__ == "__main__":
    d_model, d_ffn = 32, 64
    n_levels, n_heads, n_points = 4, 4, 4
    spatial_shapes = ((8, 8), (4, 4), (2, 2), (2, 2))    # (H_l, W_l) per level
    level_start_index = []
    acc = 0
    for (hh, ww) in spatial_shapes:
        level_start_index.append(acc)
        acc += hh * ww
    level_start_index = tuple(level_start_index)
    Len_in = acc                 # 88
    N, Lq = 2, Len_in

    key = jax.random.PRNGKey(0)
    keys = jax.random.split(key, 16)

    def wgt(k, shape, scale=0.05):
        return (scale * jax.random.normal(k, shape)).astype(jnp.float32)

    raw_params = dict(
        w_value=wgt(keys[0], (d_model, d_model)),
        b_value=jnp.zeros((d_model,), jnp.float32),
        w_off=wgt(keys[1], (d_model, n_heads * n_levels * n_points * 2)),
        b_off=wgt(keys[2], (n_heads * n_levels * n_points * 2,), 0.1),
        w_aw=wgt(keys[3], (d_model, n_heads * n_levels * n_points)),
        b_aw=jnp.zeros((n_heads * n_levels * n_points,), jnp.float32),
        w_out=wgt(keys[4], (d_model, d_model)),
        b_out=jnp.zeros((d_model,), jnp.float32),
        ln1_g=jnp.ones((d_model,), jnp.float32),
        ln1_b=jnp.zeros((d_model,), jnp.float32),
        w1=wgt(keys[5], (d_model, d_ffn)),
        b1=jnp.zeros((d_ffn,), jnp.float32),
        w2=wgt(keys[6], (d_ffn, d_model)),
        b2=jnp.zeros((d_model,), jnp.float32),
        ln2_g=jnp.ones((d_model,), jnp.float32),
        ln2_b=jnp.zeros((d_model,), jnp.float32),
    )
    params = prepare_params(raw_params)

    src = jax.random.normal(keys[7], (N, Lq, d_model), jnp.float32)
    pos = jax.random.normal(keys[8], (N, Lq, d_model), jnp.float32)
    reference_points = jax.random.uniform(keys[9], (N, Lq, n_levels, 2),
                                          jnp.float32)

    out = encoder_layer_forward(params, src, pos, reference_points,
                                spatial_shapes, level_start_index, None,
                                n_heads=n_heads, n_levels=n_levels,
                                n_points=n_points)
    out = jax.block_until_ready(out)

    ref = reference_forward(raw_params, src, pos, reference_points,
                            spatial_shapes, level_start_index, None,
                            n_heads=n_heads, n_levels=n_levels,
                            n_points=n_points)
    ref = jax.block_until_ready(ref)

    assert out.shape == (N, Lq, d_model)
    assert jnp.allclose(out, ref, atol=3e-2, rtol=3e-2), (
        float(jnp.max(jnp.abs(out - ref))))
    print("KERNEL_OK")
</pallas_src>

<mosaic_0001>
module attributes {stable_mosaic.version = 11 : i64} {
  func.func @_proj_kernel(%arg0: i32, %arg1: memref<88x32xf32, #tpu.memory_space<vmem>>, %arg2: memref<88x32xf32, #tpu.memory_space<vmem>>, %arg3: memref<32x32xbf16, #tpu.memory_space<vmem>>, %arg4: memref<1x32xf32, #tpu.memory_space<vmem>>, %arg5: memref<32x192xbf16, #tpu.memory_space<vmem>>, %arg6: memref<1x192xf32, #tpu.memory_space<vmem>>, %arg7: memref<88x32xbf16, #tpu.memory_space<vmem>>, %arg8: memref<88x192xf32, #tpu.memory_space<vmem>>) attributes {dimension_semantics = [#tpu.dimension_semantics<parallel>], iteration_bounds = array<i64: 2>, scalar_prefetch = 0 : i64, scratch_operands = 0 : i64, tpu.core_type = #tpu.core_type<tc>, window_params = [{transform_indices = @transform_0, window_bounds = array<i64: 88, 32>}, {transform_indices = @transform_1, window_bounds = array<i64: 88, 32>}, {pipeline_mode = #tpu.pipeline_mode<synchronous>, transform_indices = @transform_2, window_bounds = array<i64: 32, 32>}, {pipeline_mode = #tpu.pipeline_mode<synchronous>, transform_indices = @transform_3, window_bounds = array<i64: 1, 32>}, {pipeline_mode = #tpu.pipeline_mode<synchronous>, transform_indices = @transform_4, window_bounds = array<i64: 32, 192>}, {pipeline_mode = #tpu.pipeline_mode<synchronous>, transform_indices = @transform_5, window_bounds = array<i64: 1, 192>}, {transform_indices = @transform_6, window_bounds = array<i64: 88, 32>}, {transform_indices = @transform_7, window_bounds = array<i64: 88, 192>}]} {
    %c0 = arith.constant 0 : index
    %c0_0 = arith.constant 0 : index
    %0 = vector.load %arg1[%c0, %c0_0] : memref<88x32xf32, #tpu.memory_space<vmem>>, vector<88x32xf32>
    %c0_1 = arith.constant 0 : index
    %c0_2 = arith.constant 0 : index
    %1 = vector.load %arg2[%c0_1, %c0_2] : memref<88x32xf32, #tpu.memory_space<vmem>>, vector<88x32xf32>
    %2 = arith.addf %0, %1 : vector<88x32xf32>
    %3 = arith.truncf %0 : vector<88x32xf32> to vector<88x32xbf16>
    %c0_3 = arith.constant 0 : index
    %c0_4 = arith.constant 0 : index
    %4 = vector.load %arg3[%c0_3, %c0_4] : memref<32x32xbf16, #tpu.memory_space<vmem>>, vector<32x32xbf16>
    %cst = arith.constant dense<0.000000e+00> : vector<88x32xf32>
    %5 = tpu.matmul %3, %4, %cst {dimension_numbers = #tpu.dot_dimension_numbers<[1], [0], [0], [1], [0, 0, 1, 1], [], []>} : vector<88x32xbf16>, vector<32x32xbf16>, vector<88x32xf32> -> vector<88x32xf32>
    %c0_5 = arith.constant 0 : index
    %c0_6 = arith.constant 0 : index
    %6 = vector.load %arg4[%c0_5, %c0_6] : memref<1x32xf32, #tpu.memory_space<vmem>>, vector<1x32xf32>
    %7 = vector.broadcast %6 : vector<1x32xf32> to vector<88x32xf32>
    %8 = arith.addf %5, %7 : vector<88x32xf32>
    %9 = arith.truncf %8 : vector<88x32xf32> to vector<88x32xbf16>
    %c0_7 = arith.constant 0 : index
    %c0_8 = arith.constant 0 : index
    %10 = vector.load %arg7[%c0_7, %c0_8] : memref<88x32xbf16, #tpu.memory_space<vmem>>, vector<88x32xbf16>
    tpu.vector_store %arg7[%c0_7, %c0_8], %9 {strides = array<i32>} : memref<88x32xbf16, #tpu.memory_space<vmem>>, vector<88x32xbf16>,
    %11 = arith.truncf %2 : vector<88x32xf32> to vector<88x32xbf16>
    %c0_9 = arith.constant 0 : index
    %c0_10 = arith.constant 0 : index
    %12 = vector.load %arg5[%c0_9, %c0_10] : memref<32x192xbf16, #tpu.memory_space<vmem>>, vector<32x192xbf16>
    %cst_11 = arith.constant dense<0.000000e+00> : vector<88x192xf32>
    %13 = tpu.matmul %11, %12, %cst_11 {dimension_numbers = #tpu.dot_dimension_numbers<[1], [0], [0], [1], [0, 0, 1, 1], [], []>} : vector<88x32xbf16>, vector<32x192xbf16>, vector<88x192xf32> -> vector<88x192xf32>
    %c0_12 = arith.constant 0 : index
    %c0_13 = arith.constant 0 : index
    %14 = vector.load %arg6[%c0_12, %c0_13] : memref<1x192xf32, #tpu.memory_space<vmem>>, vector<1x192xf32>
    %15 = vector.broadcast %14 : vector<1x192xf32> to vector<88x192xf32>
    %16 = arith.addf %13, %15 : vector<88x192xf32>
    %c0_14 = arith.constant 0 : index
    %c0_15 = arith.constant 0 : index
    %17 = vector.load %arg8[%c0_14, %c0_15] : memref<88x192xf32, #tpu.memory_space<vmem>>, vector<88x192xf32>
    tpu.vector_store %arg8[%c0_14, %c0_15], %16 {strides = array<i32>} : memref<88x192xf32, #tpu.memory_space<vmem>>, vector<88x192xf32>,
    return
  }
  func.func @transform_0(%arg0: i32) -> (i32, i32) {
    %c0_i32 = arith.constant 0 : i32
    %c0_i32_0 = arith.constant 0 : i32
    return %arg0, %c0_i32 : i32, i32
  }
  func.func @transform_1(%arg0: i32) -> (i32, i32) {
    %c0_i32 = arith.constant 0 : i32
    %c0_i32_0 = arith.constant 0 : i32
    return %arg0, %c0_i32 : i32, i32
  }
  func.func @transform_2(%arg0: i32) -> (i32, i32) {
    %c0_i32 = arith.constant 0 : i32
    %c0_i32_0 = arith.constant 0 : i32
    %c0_i32_1 = arith.constant 0 : i32
    return %c0_i32, %c0_i32_0 : i32, i32
  }
  func.func @transform_3(%arg0: i32) -> (i32, i32) {
    %c0_i32 = arith.constant 0 : i32
    %c0_i32_0 = arith.constant 0 : i32
    %c0_i32_1 = arith.constant 0 : i32
    return %c0_i32, %c0_i32_0 : i32, i32
  }
  func.func @transform_4(%arg0: i32) -> (i32, i32) {
    %c0_i32 = arith.constant 0 : i32
    %c0_i32_0 = arith.constant 0 : i32
    %c0_i32_1 = arith.constant 0 : i32
    return %c0_i32, %c0_i32_0 : i32, i32
  }
  func.func @transform_5(%arg0: i32) -> (i32, i32) {
    %c0_i32 = arith.constant 0 : i32
    %c0_i32_0 = arith.constant 0 : i32
    %c0_i32_1 = arith.constant 0 : i32
    return %c0_i32, %c0_i32_0 : i32, i32
  }
  func.func @transform_6(%arg0: i32) -> (i32, i32) {
    %c0_i32 = arith.constant 0 : i32
    %c0_i32_0 = arith.constant 0 : i32
    return %arg0, %c0_i32 : i32, i32
  }
  func.func @transform_7(%arg0: i32) -> (i32, i32) {
    %c0_i32 = arith.constant 0 : i32
    %c0_i32_0 = arith.constant 0 : i32
    return %arg0, %c0_i32 : i32, i32
  }
}

</mosaic_0001>

<bundles_post_ra>
// kernel: tpu_custom_call.1
= control target key start
LH: loop header
LB: loop body
LE: loop exit
PB: predicated region body
PF: predicated region fallthrough
CT: control target
= control target key end

     0   :  { %s2077_s0 = inlined_call_operand.hbm [shape: f32[176,32], index: 0, kind: input, shape index: {}]   ;;  %s2078_s1 = inlined_call_operand.hbm [shape: f32[176,32], index: 1, kind: input, shape index: {}]   ;;  %s2079_s2 = inlined_call_operand.hbm [shape: bf16[32,32], index: 2, kind: input, shape index: {}]   ;;  %s2080_s3 = inlined_call_operand.hbm [shape: f32[1,32], index: 3, kind: input, shape index: {}]   ;;  %s2081_s4 = inlined_call_operand.hbm [shape: bf16[32,192], index: 4, kind: input, shape index: {}]   ;;  %s2082_s5 = inlined_call_operand.hbm [shape: f32[1,192], index: 5, kind: input, shape index: {}]   ;;  %s2083_s6 = inlined_call_operand.hbm [shape: bf16[176,32], index: 6, kind: output, shape index: {0}]   ;;  %s2084_s7 = inlined_call_operand.hbm [shape: f32[176,192], index: 7, kind: output, shape index: {1}]  }
   0x1   :  { %2094 = sst [smem:[#allocation24_spill]] %s2077_s0 }
   0x2   :  { %2095 = sst [smem:[#allocation25_spill]] %s2079_s2 }
   0x3   :  { %2096 = sst [smem:[#allocation26_spill]] %s2080_s3 }
   0x4   :  { %13 = vsyncpa [#allocation3], 0 }
   0x5   :  { %15 = vsyncpa [#allocation3 + $0x1], 0 }
   0x6   :  { %16 = vsyncpa [#allocation6], 0 }
   0x7   :  { %18 = vsyncpa [#allocation6 + $0x1], 0 }
   0x8   :  { %19 = vsyncpa [#allocation9], 0 }
   0x9   :  { %20 = vsyncpa [#allocation12], 0 }
   0xa   :  { %21 = vsyncpa [#allocation4], 0 }
   0xb   :  { %23 = vsyncpa [#allocation4 + $0x1], 0 }
   0xc   :  { %24 = vsyncpa [#allocation15], 0 }
   0xd   :  { %26 = vsyncpa [#allocation15 + $0x1], 0  ;;  %s1559_s24 = smov 0   ;;  %s1561_s25 = smov 0  }
   0xe   :  { %s1563_s26 = smov 0   ;;  %s1565_s27 = smov 0  }
   0xf LB: > { %s1580_s28 = sadd.s32 4294967295, %s1500_s27   ;;  %s1001_s29 = sadd.s32 4294967294, %s1500_s27   ;;  %s1500_s27 = sphi %s1565_s27, %s2127_s27   ;;  %s1496_s26 = sphi %s1563_s26, %s2126_s26   ;;  %s1492_s25 = sphi %s1561_s25, %s2125_s25   ;;  %s1488_s24 = sphi %s1559_s24, %s2124_s24  }
  0x10   : > { %p52_p0 = scmp.ne.s32.totalorder %s1492_s25, %s1488_s24  ;;  %p2085_p1 = scmp.eq.s32.totalorder %s1580_s28, 0 }
  0x11   : > { %p192_p3 = scmp.eq.s32.totalorder %s1001_s29, 1  ;;  %p1002_p5 = scmp.ge.s32.totalorder %s1500_s27, 1 }
  0x12   : > { %p1589_p4 = por %p2085_p1, %p52_p0  ;;  %p225_p7 = scmp.lt.s32.totalorder %s1500_s27, 3 }
  0x13   : > { %p1594_p6 = por %p192_p3, %p52_p0  ;;  %s1502_s10 = smov [#allocation7]  }
  0x14   : > { %s2097_s30 = scalar_select %p1589_p4, 1, 0 }
  0x15   : > { %s2098_s8 = scalar_select %p1594_p6, 1, 0 }
  0x16   : > { %p1599_p8 = pnand %p1002_p5, %p225_p7  ;;  %s237_s11 = sshll.u32 %s1502_s10, 4  ;;  %s1603_s11 = int_to_ptr.vmem [resolvable:$true] %s237_s11 }
  0x17   : > { %2099 = sst [smem:[#allocation23_spill]] %s2098_s8  ;;  %s1503_s13 = smov [#allocation8]  }
  0x18   : > { %s2100_s9 = scalar_select %p1599_p8, 1, 0 }
  0x19   : > { %p1124_p9 = pneg %p1599_p8  ;;  %s251_s14 = sshll.u32 %s1503_s13, 4  ;;  %s1614_s14 = int_to_ptr.vmem [resolvable:$true] %s251_s14 }
  0x1a   : > { %s1504_s15 = smov [#allocation10]   ;;  %s2102_s2 = sld [smem:[#allocation25_spill]] }
  0x1b   : > { %p1610_p11 = pnand %p1124_p9, %p2085_p1  ;;  %s1616_s16 = sshll.u32 %s1504_s15, 4  ;;  %s262_s16 = int_to_ptr.vmem [resolvable:$true] %s1616_s16 }
  0x1d   : > { %p1626_p13 = pneg %p1610_p11 }
  0x20   : > { %s1214_s19 = scalar_lea.hbm %s2102_s2, 256 }
  0x21   : > { %p1215_p12 = scmp.ne.s32.totalorder %s2102_s2, %s1214_s19  ;;  %p1221_p5 = scmp.lt.u32.totalorder %s1214_s19, %s2102_s2 }
  0x23   : > { %p1217_p0 = pnand %p1626_p13, %p1215_p12 }
  0x25   : > { %p1218_p3 = pneg %p1217_p0 }
  0x27   : > { %p1223_p7 = pnand %p1221_p5, %p1218_p3 }
  0x29   : > { %1226 = shalt.err (!%p1223_p7)
}
  0x2a   : > { %s1227_s10 = scalar_lea.vmem %s1603_s11, 256  ;;  %p1235_p2 = scmp.lt.s32.totalorder %s1603_s11, %s1603_s11 }
  0x2b   : > { %p1228_p9 = scmp.ne.s32.totalorder %s1603_s11, %s1227_s10  ;;  %p1236_p6 = scmp.lt.s32.totalorder %s1227_s10, %s1227_s10 }
  0x2d   : > { %p1230_p10 = pnand %p1228_p9, %p1626_p13  ;;  %p1237_p12 = por %p1236_p6, %p1235_p2 }
  0x2f   : > { %p1231_p1 = pneg %p1230_p10 }
  0x31   : > { %p1238_p0 = pnand %p1237_p12, %p1231_p1 }
  0x33   : > { %1241 = shalt.err (!%p1238_p0)
}
  0x34   : > { %s1505_s13 = smov 64   ;;  %s1506_s15 = smov 4  }
  0x35   : > { %1127 = dma.hbm_to_vmem [thread:$0]  (!%p1610_p11), %s2102_s2, 256, %s1603_s11, [#allocation6], %s1505_s13, %s1505_s13, %s1506_s15  }
  0x36   : > { %s2104_s3 = sld [smem:[#allocation26_spill]] }
  0x3c   : > { %s1242_s21 = scalar_lea.hbm %s2104_s3, 16 }
  0x3d   : > { %p1243_p2 = scmp.ne.s32.totalorder %s2104_s3, %s1242_s21  ;;  %p1249_p10 = scmp.lt.u32.totalorder %s1242_s21, %s2104_s3 }
  0x3f   : > { %p1245_p1 = pnand %p1243_p2, %p1626_p13 }
  0x41   : > { %p1246_p6 = pneg %p1245_p1 }
  0x43   : > { %p1251_p3 = pnand %p1249_p10, %p1246_p6 }
  0x45   : > { %1254 = shalt.err (!%p1251_p3)
}
  0x46   : > { %s1255_s11 = scalar_lea.vmem %s1614_s14, 16  ;;  %s1262_s13 = scalar_lea.vmem %s1614_s14, 32 }
  0x47   : > { %p1256_p5 = scmp.ne.s32.totalorder %s1614_s14, %s1255_s11  ;;  %p1263_p12 = scmp.lt.s32.totalorder %s1614_s14, %s1614_s14 }
  0x48   : > { %p1264_p0 = scmp.lt.s32.totalorder %s1262_s13, %s1255_s11 }
  0x49   : > { %p1258_p7 = pnand %p1256_p5, %p1626_p13 }
  0x4a   : > { %p1265_p2 = por %p1264_p0, %p1263_p12 }
  0x4b   : > { %p1259_p9 = pneg %p1258_p7 }
  0x4d   : > { %p1266_p1 = pnand %p1265_p2, %p1259_p9 }
  0x4f   : > { %1269 = shalt.err (!%p1266_p1)
}
  0x50   : > { %1130 = dma.hbm_to_vmem [thread:$0]  (!%p1610_p11), %s2104_s3, 16, %s1614_s14, [#allocation9]  }
  0x51   : > { %s1270_s19 = scalar_lea.hbm %s2081_s4, 512 }
  0x52   : > { %p1271_p6 = scmp.ne.s32.totalorder %s2081_s4, %s1270_s19  ;;  %p1277_p5 = scmp.lt.u32.totalorder %s1270_s19, %s2081_s4 }
  0x54   : > { %p1273_p10 = pnand %p1271_p6, %p1626_p13 }
  0x56   : > { %p1274_p3 = pneg %p1273_p10 }
  0x58   : > { %p1279_p7 = pnand %p1277_p5, %p1274_p3 }
  0x5a   : > { %1282 = shalt.err (!%p1279_p7)
}
  0x5b   : > { %s1283_s10 = scalar_lea.vmem %s262_s16, 512  ;;  %p1291_p2 = scmp.lt.s32.totalorder %s262_s16, %s262_s16 }
  0x5c   : > { %p1284_p9 = scmp.ne.s32.totalorder %s262_s16, %s1283_s10  ;;  %p1292_p1 = scmp.lt.s32.totalorder %s1283_s10, %s1283_s10 }
  0x5e   : > { %p1286_p12 = pnand %p1284_p9, %p1626_p13  ;;  %p1293_p4 = por %p1292_p1, %p1291_p2 }
  0x60   : > { %p1287_p0 = pneg %p1286_p12 }
  0x62   : > { %p1294_p8 = pnand %p1293_p4, %p1287_p0 }
  0x64   : > { %1297 = shalt.err (!%p1294_p8)
}
  0x65   : > { %s2089_s14 = smov 128   ;;  %s2092_s11 = smov 8  }
  0x66   : > { %1133 = dma.hbm_to_vmem [thread:$0]  (!%p1610_p11), %s2081_s4, 512, %s262_s16, [#allocation9], %s2089_s14, %s2089_s14, %s2092_s11  }
  0x67   : > { %s1509_s15 = smov [#allocation11]   ;;  %s1298_s20 = scalar_lea.hbm %s2082_s5, 32 }
  0x68   : > { %s275_s17 = sshll.u32 %s1509_s15, 4  ;;  %p1299_p4 = scmp.ne.s32.totalorder %s2082_s5, %s1298_s20  ;;  %s276_s17 = int_to_ptr.vmem [resolvable:$true] %s275_s17 }
  0x69   : > { %p1305_p10 = scmp.lt.u32.totalorder %s1298_s20, %s2082_s5 }
  0x6a   : > { %p1301_p8 = pnand %p1299_p4, %p1626_p13 }
  0x6c   : > { %p1302_p6 = pneg %p1301_p8 }
  0x6e   : > { %p1307_p3 = pnand %p1305_p10, %p1302_p6 }
  0x70   : > { %1310 = shalt.err (!%p1307_p3)
}
  0x71   : > { %s1311_s16 = scalar_lea.vmem %s276_s17, 32  ;;  %p1319_p12 = scmp.lt.s32.totalorder %s276_s17, %s276_s17 }
  0x72   : > { %p1312_p5 = scmp.ne.s32.totalorder %s276_s17, %s1311_s16  ;;  %p1320_p0 = scmp.lt.s32.totalorder %s1311_s16, %s1311_s16 }
  0x74   : > { %p1314_p7 = pnand %p1312_p5, %p1626_p13  ;;  %p1321_p2 = por %p1320_p0, %p1319_p12 }
  0x76   : > { %p1315_p9 = pneg %p1314_p7 }
  0x78   : > { %p1322_p1 = pnand %p1321_p2, %p1315_p9 }
  0x7a   : > { %1325 = shalt.err (!%p1322_p1)
}
  0x7b   : > { %1136 = dma.hbm_to_vmem [thread:$0]  (!%p1610_p11), %s2082_s5, 32, %s276_s17, [#allocation12]  }
  0x7c   : > { %s1712_s22 = sadd.s32 1, %s1500_s27   ;;  %s39_s12 = sadd.s32 1, %s1496_s26 }
  0x7d   : > { %s36_s15 = ssub.s32 %s1500_s27, %s1712_s22  ;;  %p46_p13 = scmp.ne.s32.totalorder %s1496_s26, %s1492_s25 }
  0x7e   : > { %p37_p4 = scmp.eq.s32.totalorder %s36_s15, 0  ;;  %p47_p8 = scmp.eq.s32.totalorder %s1500_s27, 0 }
  0x7f   : > { %p2105_p6 = scmp.eq.s32.totalorder %s1580_s28, 1  ;;  %p1155_p3 = scmp.lt.s32.totalorder %s1500_s27, 2 }
  0x80   : > { %s1728_s19 = scalar_select %p37_p4, %s1496_s26, %s39_s12  }
  0x81   : > { %p1722_p10 = por %p2105_p6, %p46_p13  ;;  %p48_p5 = por %p47_p8, %p46_p13 }
  0x82   : > { %s286_s20 = sand.u32 1, %s1496_s26   ;;  %s2091_s21 = smul.u32 1408, %s1500_s27 }
  0x83   : > { %s1731_s17 = smul.u32 88, %s286_s20  ;;  %p1734_p11 = pnand %p1155_p3, %p48_p5 }
  0x84   : > { %s2108_s0 = sld [smem:[#allocation24_spill]]  ;;  %s1749_s15 = scalar_lea.sflag [#allocation3], %s286_s20 }
  0x85   : > { %s290_s8 = scalar_lea.vmem [#allocation2], %s1731_s17  ;;  %p1328_p9 = pneg %p1734_p11 }
  0x86   : > { %s297_s12 = sshll.u32 %s290_s8, 4  ;;  %s1747_s12 = int_to_ptr.vmem [resolvable:$true] %s297_s12 }
  0x8a   : > { %s1744_s13 = scalar_lea.hbm %s2108_s0, %s2091_s21  ;;  %s1331_s29 = scalar_lea.hbm %s2108_s0, 2816 }
  0x8b   : > { %s1326_s14 = scalar_lea.hbm %s1744_s13, 1408  ;;  %p1332_p2 = scmp.lt.u32.totalorder %s1744_s13, %s2108_s0 }
  0x8c   : > { %p1327_p7 = scmp.ne.s32.totalorder %s1744_s13, %s1326_s14  ;;  %p1333_p1 = scmp.lt.u32.totalorder %s1331_s29, %s1326_s14 }
  0x8d   : > { %p1335_p4 = scmp.lt.u32.totalorder %s1326_s14, %s1744_s13 }
  0x8e   : > { %p1329_p12 = pnand %p1328_p9, %p1327_p7  ;;  %p1334_p13 = por %p1333_p1, %p1332_p2 }
  0x90   : > { %p1330_p0 = pneg %p1329_p12  ;;  %p1336_p8 = por %p1335_p4, %p1334_p13 }
  0x92   : > { %p1337_p6 = pnand %p1336_p8, %p1330_p0 }
  0x94   : > { %1340 = shalt.err (!%p1337_p6)
}
  0x95   : > { %s1341_s20 = scalar_lea.vmem %s1747_s12, 1408  ;;  %s1510_s8 = smov [#allocation2]  }
  0x96   : > { %p1342_p3 = scmp.ne.s32.totalorder %s1747_s12, %s1341_s20  ;;  %s1346_s10 = sshll.u32 %s1510_s8, 4  ;;  %s1347_s10 = int_to_ptr.vmem [resolvable:$false] %s1346_s10 }
  0x97   : > { %s1348_s11 = scalar_lea.vmem %s1347_s10, 2816  ;;  %p1349_p12 = scmp.lt.s32.totalorder %s1747_s12, %s1347_s10 }
  0x98   : > { %p1344_p5 = pnand %p1342_p3, %p1328_p9  ;;  %p1350_p2 = scmp.lt.s32.totalorder %s1348_s11, %s1341_s20 }
  0x9a   : > { %p1345_p7 = pneg %p1344_p5  ;;  %p1351_p1 = por %p1350_p2, %p1349_p12 }
  0x9c   : > { %p1352_p13 = pnand %p1351_p1, %p1345_p7 }
  0x9e   : > { %1355 = shalt.err (!%p1352_p13)
}
  0x9f   : > { %s2109_s14 = smov 8   ;;  %s2110_s21 = smov 128  }
  0xa0   : > { %1140 = dma.hbm_to_vmem [thread:$0]  (!%p1734_p11), %s1744_s13, 1408, %s1747_s12, %s1749_s15, %s2110_s21, %s2110_s21, %s2109_s14  }
  0xa1   : > { %s2111_s29 = smul.u32 1408, %s1500_s27  ;;  %s311_s10 = scalar_lea.vmem [#allocation5], %s1731_s17 }
  0xa2   : > { %s318_s11 = sshll.u32 %s311_s10, 4  ;;  %s2112_s0 = sand.u32 1, %s1500_s27   ;;  %s1788_s11 = int_to_ptr.vmem [resolvable:$true] %s318_s11 }
  0xa3   : > { %s1785_s20 = scalar_lea.hbm %s2078_s1, %s2111_s29  ;;  %s1792_s2 = scalar_lea.sflag [#allocation6], %s2112_s0 }
  0xa4   : > { %s1356_s3 = scalar_lea.hbm %s1785_s20, 1408  ;;  %s1361_s15 = scalar_lea.hbm %s2078_s1, 2816 }
  0xa5   : > { %p1357_p0 = scmp.ne.s32.totalorder %s1785_s20, %s1356_s3  ;;  %p1362_p6 = scmp.lt.u32.totalorder %s1785_s20, %s2078_s1 }
  0xa6   : > { %p1363_p3 = scmp.lt.u32.totalorder %s1361_s15, %s1356_s3  ;;  %p1365_p7 = scmp.lt.u32.totalorder %s1356_s3, %s1785_s20 }
  0xa7   : > { %p1359_p4 = pnand %p1357_p0, %p1328_p9 }
  0xa8   : > { %p1364_p5 = por %p1363_p3, %p1362_p6 }
  0xa9   : > { %p1360_p8 = pneg %p1359_p4 }
  0xaa   : > { %p1366_p12 = por %p1365_p7, %p1364_p5 }
  0xac   : > { %p1367_p2 = pnand %p1366_p12, %p1360_p8 }
  0xae   : > { %1370 = shalt.err (!%p1367_p2)
}
  0xaf   : > { %s1371_s0 = scalar_lea.vmem %s1788_s11, 1408  ;;  %s1511_s17 = smov [#allocation5]  }
  0xb0   : > { %p1372_p1 = scmp.ne.s32.totalorder %s1788_s11, %s1371_s0  ;;  %s1376_s8 = sshll.u32 %s1511_s17, 4  ;;  %s1377_s8 = int_to_ptr.vmem [resolvable:$false] %s1376_s8 }
  0xb1   : > { %s1378_s10 = scalar_lea.vmem %s1377_s8, 2816  ;;  %p1379_p4 = scmp.lt.s32.totalorder %s1788_s11, %s1377_s8 }
  0xb2   : > { %p1374_p13 = pnand %p1372_p1, %p1328_p9  ;;  %p1380_p6 = scmp.lt.s32.totalorder %s1378_s10, %s1371_s0 }
  0xb4   : > { %p1375_p0 = pneg %p1374_p13  ;;  %p1381_p3 = por %p1380_p6, %p1379_p4 }
  0xb6   : > { %p1382_p5 = pnand %p1381_p3, %p1375_p0 }
  0xb8   : > { %1385 = shalt.err (!%p1382_p5)
}
  0xb9   : > { %1143 = dma.hbm_to_vmem [thread:$0]  (!%p1734_p11), %s1785_s20, 1408, %s1788_s11, %s1792_s2, %s2110_s21, %s2110_s21, %s2109_s14  }
  0xba   : > { %p2113_p9 = scmp.ne.s32.totalorder %s2100_s9, 0 }
  0xbb   : > { %s1824_s3 = sand.u32 (!%p2113_p9), 1, %s1492_s25   ;;  %p2114_p8 = scmp.ne.s32.totalorder (!%p2113_p9), %s2097_s30, 0 }
  0xbc   : > { %330 = sbr.rel (%p2113_p9) target bundleno = 497 (0x1f1), region = 44  ;;  %s333_s12 = scalar_lea.sflag (!%p2113_p9), [#allocation3], %s1824_s3 }
  0xbd   : > { %s1097_s13 = smul.u32 (!%p2113_p9), 88, %s1824_s3 }
  0xbf   : > { %s1828_s15 = scalar_lea.vmem (!%p2113_p9), [#allocation2], %s1097_s13 }
  0xc3   : > { %1459 = dma.done.wait (%p2114_p8), %s333_s12, 1408  }
  0xc4   : > { %1461 = vsyncadd (%p2114_p8), %s333_s12, 4294965888  ;;  %s341_s2 = sand.u32 1, %s1580_s28   ;;  %s1835_s23 = scalar_lea.vmem [#allocation5], %s1097_s13 }
  0xc5   : > { %s342_s9 = scalar_lea.sflag [#allocation6], %s341_s2 }
  0xc6   : > { %1463 = dma.done.wait (%p2114_p8), %s342_s9, 1408  }
  0xc7   : > { %1465 = vsyncadd (%p2114_p8), %s342_s9, 4294965888  ;;  %p2115_p11 = scmp.eq.s32.totalorder %s1580_s28, 0 }
  0xc9   : > { %1467 = dma.done.wait (%p2115_p11), [#allocation6], 256   ;;  %p2116_p7 = pmov %p2115_p11 }
  0xcb   : > { %1469 = vsyncadd (%p2116_p7), [#allocation6], 4294967040  ;;  %p2117_p12 = pmov %p2116_p7 }
  0xcc   : > { %p2118_p2 = pmov %p2116_p7 }
  0xcd   : > { %1471 = dma.done.wait (%p2117_p12), [#allocation9], 528  }
  0xce   : > { %1473 = vsyncadd (%p2118_p2), [#allocation9], 4294966768  ;;  %p2119_p1 = pmov %p2118_p2 }
  0xd0   : > { %1475 = dma.done.wait (%p2119_p1), [#allocation12], 32   ;;  %p2120_p13 = pmov %p2119_p1 }
  0xd1   : > { %v1512_v0 = vmov 0   ;;  %v1206_v1 = vld [vmem:[#allocation10 + $0x4] ss:$8 sps:$4 sm:$0xff]   ;;  %v1208_v2 = vld [vmem:[#allocation10] ss:$8 sps:$4 sm:$0xff]   ;;  %v1213_v6 = vld [vmem:[#allocation7 + $0x8] sm:$0xff]   ;;  %v637_v52 = vlaneseq }
  0xd2   : > { %1477 = vsyncadd (%p2120_p13), [#allocation12], 4294967264  ;;  %727 = vmatprep.mubr.bf16.mxu1 %v1512_v0  ;;  %1091 = vmatprep.subr.bf16.mxu1 %v1206_v1  ;;  %v1209_v3 = vld [vmem:[#allocation7] sm:$0xff]   ;;  %v409_v7 = vld [vmem:[%s1828_s15 + $0x10] sm:$0xff]  ;;  %vm469_vm0 = vcmask 261120   ;;  %s1099_s30 = smul.u32 176, %s1824_s3 }
  0xd3   : > { %1093 = vmatpush1.bf16.msra.mxu1 %v1208_v2  ;;  %v1210_v4 = vld [vmem:[#allocation10 + $0x14] ss:$8 sps:$4 sm:$0xff]   ;;  %v1212_v5 = vld [vmem:[#allocation10 + $0x10] ss:$8 sps:$4 sm:$0xff]   ;;  %1075 = vmatprep.subr.bf16.mxu0 %v1209_v3  ;;  %v638_v53 = vshrl.u32 %v637_v52, 7  ;;  %s1098_s14 = smul.u32 44, %s1824_s3 }
  0xd4   : > { %1076 = vmatpush3.bf16.msra.mxu0 %v1209_v3  ;;  %1092 = vmatprep.subr.bf16.mxu1 %v1210_v4  ;;  %v410_v8 = vld [vmem:[%s1828_s15 + $0x18] sm:$0xff]  ;;  %v420_v9 = vld [vmem:[%s1835_s23 + $0x10] sm:$0xff]  ;;  %v421_v10 = vld [vmem:[%s1835_s23 + $0x18] sm:$0xff]  ;;  %vm777_vm1 = vcmask 523264   ;;  %s1903_s21 = scalar_lea.vmem [#allocation14], %s1099_s30  ;;  %vm613_vm2 = vcmask 257024  }
  0xd5   : > { %1077 = vmatprep.subr.bf16.mxu0 %v1213_v6  ;;  %v431_v11 = vadd.f32 %v420_v9, %v409_v7  ;;  %v432_v12 = vadd.f32 %v421_v10, %v410_v8  ;;  %v407_v13 = vld [vmem:[%s1828_s15] sm:$0xff]  ;;  %v408_v14 = vld [vmem:[%s1828_s15 + $0x8] sm:$0xff]  ;;  %v441_v19 = vpack.c.bf16 %v410_v8, %v409_v7  ;;  %v422_v20 = vld [vmem:[%s1835_s23 + $0x20] sm:$0xff]  ;;  %v639_v54 = vsub.s32 0, %v638_v53  ;;  %s1917_s20 = scalar_lea.vmem [#allocation13], %s1098_s14  ;;  %s1063_s11 = smul.u32 704, %s1580_s28 }
  0xd6   : > { %v440_v15 = vpack.c.bf16 %v408_v14, %v407_v13  ;;  %v411_v16 = vld [vmem:[%s1828_s15 + $0x20] sm:$0xff]  ;;  %v412_v17 = vld [vmem:[%s1828_s15 + $0x28] sm:$0xff]  ;;  %v423_v21 = vld [vmem:[%s1835_s23 + $0x28] sm:$0xff]  ;;  %v643_v56 = vsub.s32 1, %v638_v53  ;;  %s818_s29 = sshll.u32 %s1917_s20, 4  ;;  %s800_s8 = scalar_lea.sflag [#allocation4], %s1824_s3  ;;  %s1971_s29 = int_to_ptr.vmem [resolvable:$true] %s818_s29 }
  0xd7   : > { %1094 = vmatpush1.bf16.msra.mxu1 %v1212_v5  ;;  %v626_v18 = vpack.c.bf16 %v432_v12, %v431_v11  ;;  %v442_v22 = vpack.c.bf16 %v412_v17, %v411_v16  ;;  %v433_v23 = vadd.f32 %v422_v20, %v411_v16  ;;  %v434_v24 = vadd.f32 %v423_v21, %v412_v17  ;;  %v413_v25 = vld [vmem:[%s1828_s15 + $0x30] sm:$0xff]  ;;  %v414_v26 = vld [vmem:[%s1828_s15 + $0x38] sm:$0xff]  ;;  %v415_v28 = vld [vmem:[%s1828_s15 + $0x40] sm:$0xff]  ;;  %s1969_s17 = scalar_lea.hbm %s2083_s6, %s1063_s11  ;;  %s1386_s10 = scalar_lea.vmem %s1971_s29, 704 }
  0xd8   : > { %1078 = vmatpush3.bf16.msra.mxu0 %v1213_v6  ;;  %1079 = vmatprep.mubr.msk.bf16.mxu0 %vm469_vm0, %v440_v15  ;;  %v416_v29 = vld [vmem:[%s1828_s15 + $0x48] sm:$0xff]  ;;  %v424_v30 = vld [vmem:[%s1835_s23 + $0x30] sm:$0xff]  ;;  %v443_v32 = vpack.c.bf16 %v414_v26, %v413_v25  ;;  %v417_v36 = vld [vmem:[%s1828_s15 + $0x50] sm:$0xff]  ;;  %p1387_p0 = scmp.ne.s32.totalorder %s1971_s29, %s1386_s10  ;;  %s1513_s13 = smov [#allocation13]  }
  0xd9   : > { %685 = vmatprep.subr.bf16.mxu0 %v1206_v1  ;;  %v627_v27 = vpack.c.bf16 %v434_v24, %v433_v23  ;;  %v425_v31 = vld [vmem:[%s1835_s23 + $0x38] sm:$0xff]  ;;  %v444_v33 = vpack.c.bf16 %v416_v29, %v415_v28  ;;  %v435_v34 = vadd.f32 %v424_v30, %v413_v25  ;;  %v426_v38 = vld [vmem:[%s1835_s23 + $0x40] sm:$0xff]  ;;  %v427_v39 = vld [vmem:[%s1835_s23 + $0x48] sm:$0xff]  ;;  %v445_v40 = vpack.c.bf16 %v417_v36, %v417_v36  ;;  %s1390_s12 = sshll.u32 %s1513_s13, 4  ;;  %s1391_s12 = int_to_ptr.vmem [resolvable:$false] %s1390_s12 }
  0xda   : > { %1040 = vmatmul.mubr.msk.bf16.vlgmr.msra.gmra.mrb[0].mxu1 %vm469_vm0, %v626_v18  ;;  %v436_v35 = vadd.f32 %v425_v31, %v414_v26  ;;  %v418_v41 = vld [vmem:[%s1835_s23] sm:$0xff]  ;;  %v419_v42 = vld [vmem:[%s1835_s23 + $0x8] sm:$0xff]  ;;  %v437_v43 = vadd.f32 %v426_v38, %v415_v28  ;;  %v438_v44 = vadd.f32 %v427_v39, %v416_v29  ;;  %v428_v48 = vld [vmem:[%s1835_s23 + $0x50] sm:$0xff]  ;;  %p1388_p4 = pnand %p1387_p0, %p1722_p10  ;;  %s1392_s15 = scalar_lea.vmem %s1391_s12, 1408 }
  0xdb   : > { %737 = vmatprep.mubr.bf16.mxu1 %v1512_v0  ;;  %1080 = vmatmul.mubr.msk.bf16.vlgmr.msra.gmra.mrb[0].mxu0 %vm469_vm0, %v441_v19  ;;  %v429_v45 = vadd.f32 %v418_v41, %v407_v13  ;;  %v430_v46 = vadd.f32 %v419_v42, %v408_v14  ;;  %v439_v50 = vadd.f32 %v428_v48, %v417_v36  ;;  %v635_v55 = vld [vmem:[#allocation11] sm:$0x3]  ;;  %v1899_v60 = vld [vmem:[#allocation8] ss:$0 sm:$0xff]  ;;  %p1393_p3 = scmp.lt.s32.totalorder %s1971_s29, %s1391_s12  ;;  %p1394_p5 = scmp.lt.s32.totalorder %s1392_s15, %s1386_s10 }
  0xdc   : > { %686 = vmatpush1.bf16.msra.mxu0 %v1208_v2  ;;  %1083 = vmatprep.mubr.msk.bf16.mxu0 %vm469_vm0, %v442_v22  ;;  %v628_v37 = vpack.c.bf16 %v436_v35, %v435_v34  ;;  %v629_v47 = vpack.c.bf16 %v438_v44, %v437_v43  ;;  %v1894_v57 = vrot.slane %v635_v55, %v639_v54  ;;  %p1389_p6 = pneg %p1388_p4 }
  0xdd   : > { %687 = vmatprep.subr.bf16.mxu0 %v1210_v4  ;;  %v625_v49 = vpack.c.bf16 %v430_v46, %v429_v45  ;;  %v630_v51 = vpack.c.bf16 %v439_v50, %v439_v50  ;;  %v1896_v58 = vrot.slane %v635_v55, %v643_v56  ;;  %p1395_p9 = por %p1394_p5, %p1393_p3 }
  0xdf   : > { %p1396_p8 = pnand %p1395_p9, %p1389_p6 }
  0xe0   : > { %688 = vmatpush1.bf16.msra.mxu0 %v1212_v5 }
  0xe2   : > { %1041 = vmatmul.mubr.msk.bf16.gmra.mrb[4].mxu1 %vm469_vm0, %v627_v27 }
  0xe3   : > { %747 = vmatprep.mubr.bf16.mxu1 %v1512_v0  ;;  %1084 = vmatmul.mubr.msk.bf16.gmra.mrb[4].mxu0 %vm469_vm0, %v443_v32 }
  0xe4   : > { %1087 = vmatprep.mubr.msk.bf16.mxu0 %vm469_vm0, %v444_v33 }
  0xea   : > { %1042 = vmatmul.mubr.msk.bf16.gmra.mrb[8].mxu1 %vm469_vm0, %v628_v37 }
  0xeb   : > { %757 = vmatprep.mubr.bf16.mxu1 %v1512_v0  ;;  %1088 = vmatmul.mubr.msk.bf16.gmra.mrb[8].mxu0 %vm469_vm0, %v445_v40 }
  0xec   : > { %717 = vmatprep.mubr.bf16.mxu0 %v1512_v0 }
  0xf2   : > { %1043 = vmatmul.mubr.msk.bf16.gmra.mrb[12].mxu1 %vm469_vm0, %v629_v47 }
  0xf3   : > { %767 = vmatprep.mubr.bf16.mxu1 %v1512_v0  ;;  %1039 = vmatmul.mubr.msk.bf16.vlgmr.msra.gmra.mrb[12].mxu0 %vm469_vm0, %v625_v49 }
  0xfa   : > { %1044 = vmatmul.mubr.msk.bf16.gmra.mrb[16].mxu1 %vm469_vm0, %v630_v51 }
 0x1ad   : > { %v729_v59 = vpop.f32.mrb[0].mxu1 }
 0x1ae   : > { %v730_v61 = vadd.f32 %v729_v59, %v1894_v57  ;;  %v731_v62 = vpop.f32.mrb[1].mxu1  ;;  %v1081_v1 = vpop.f32.mrb[0].mxu0 }
 0x1af   : > { %v732_v63 = vadd.f32 %v731_v62, %v1896_v58  ;;  %v733_v0 = vpop.f32.mrb[2].mxu1  ;;  %v531_v3 = vadd.f32 %v1081_v1, %v1899_v60  ;;  %v522_v5 = vpop.f32.mrb[1].mxu0 }
 0x1b0   : > { %781 = vst [vmem:[%s1903_s21 + $0x20] sm:$0xff] %v730_v61  ;;  %v734_v2 = vadd.f32 %v733_v0, %v1894_v57  ;;  %v735_v4 = vpop.f32.mrb[3].mxu1  ;;  %v523_v7 = vadd.f32 %v1899_v60, %v522_v5  ;;  %v1082_v8 = vpop.f32.mrb[2].mxu0 }
 0x1b1   : > { %782 = vst.msk [vmem:[%s1903_s21 + $0x28] sm:$0xff] %vm777_vm1, %v732_v63  ;;  %v736_v6 = vadd.f32 %v735_v4, %v1896_v58  ;;  %v1054_v9 = vpack.c.bf16 %v531_v3, %v531_v3  ;;  %v534_v10 = vadd.f32 %v1082_v8, %v1899_v60  ;;  %v525_v11 = vpop.f32.mrb[3].mxu0 }
 0x1b2   : > { %783 = vst [vmem:[%s1903_s21 + $0x30] sm:$0xff] %v734_v2  ;;  %v1052_v12 = vpack.c.bf16 %v523_v7, %v523_v7  ;;  %v526_v13 = vadd.f32 %v1899_v60, %v525_v11 }
 0x1b3   : > { %784 = vst.msk [vmem:[%s1903_s21 + $0x38] sm:$0xff] %vm777_vm1, %v736_v6  ;;  %v1055_v14 = vpack.c.bf16 %v534_v10, %v534_v10 }
 0x1b4   : > { %616 = vst.msk [vmem:[%s1917_s20 + $0x8] sm:$0xf] %vm613_vm2, %v1054_v9  ;;  %614 = vst.msk [vmem:[%s1917_s20] sm:$0xf] %vm613_vm2, %v1052_v12  ;;  %v1053_v15 = vpack.c.bf16 %v526_v13, %v526_v13 }
 0x1b5   : > { %v739_v16 = vpop.f32.mrb[4].mxu1  ;;  %617 = vst.msk [vmem:[%s1917_s20 + $0xc] sm:$0xf] %vm613_vm2, %v1055_v14 }
 0x1b6   : > { %v740_v17 = vadd.f32 %v739_v16, %v1894_v57  ;;  %v741_v18 = vpop.f32.mrb[5].mxu1  ;;  %615 = vst.msk [vmem:[%s1917_s20 + $0x4] sm:$0xf] %vm613_vm2, %v1053_v15  ;;  %v1085_v21 = vpop.f32.mrb[4].mxu0 }
 0x1b7   : > { %v742_v19 = vadd.f32 %v741_v18, %v1896_v58  ;;  %v743_v20 = vpop.f32.mrb[6].mxu1  ;;  %v547_v23 = vadd.f32 %v1085_v21, %v1899_v60  ;;  %v538_v25 = vpop.f32.mrb[5].mxu0 }
 0x1b8   : > { %785 = vst [vmem:[%s1903_s21 + $0x40] sm:$0xff] %v740_v17  ;;  %v744_v22 = vadd.f32 %v743_v20, %v1894_v57  ;;  %v745_v24 = vpop.f32.mrb[7].mxu1  ;;  %v539_v27 = vadd.f32 %v1899_v60, %v538_v25  ;;  %v1086_v28 = vpop.f32.mrb[6].mxu0 }
 0x1b9   : > { %786 = vst.msk [vmem:[%s1903_s21 + $0x48] sm:$0xff] %vm777_vm1, %v742_v19  ;;  %v746_v26 = vadd.f32 %v745_v24, %v1896_v58  ;;  %v1058_v29 = vpack.c.bf16 %v547_v23, %v547_v23  ;;  %v550_v30 = vadd.f32 %v1086_v28, %v1899_v60  ;;  %v541_v31 = vpop.f32.mrb[7].mxu0 }
 0x1ba   : > { %787 = vst [vmem:[%s1903_s21 + $0x50] sm:$0xff] %v744_v22  ;;  %v1056_v32 = vpack.c.bf16 %v539_v27, %v539_v27  ;;  %v542_v33 = vadd.f32 %v1899_v60, %v541_v31 }
 0x1bb   : > { %788 = vst.msk [vmem:[%s1903_s21 + $0x58] sm:$0xff] %vm777_vm1, %v746_v26  ;;  %v1059_v34 = vpack.c.bf16 %v550_v30, %v550_v30 }
 0x1bc   : > { %620 = vst.msk [vmem:[%s1917_s20 + $0x18] sm:$0xf] %vm613_vm2, %v1058_v29  ;;  %618 = vst.msk [vmem:[%s1917_s20 + $0x10] sm:$0xf] %vm613_vm2, %v1056_v32  ;;  %v1057_v35 = vpack.c.bf16 %v542_v33, %v542_v33 }
 0x1bd   : > { %v749_v36 = vpop.f32.mrb[8].mxu1  ;;  %621 = vst.msk [vmem:[%s1917_s20 + $0x1c] sm:$0xf] %vm613_vm2, %v1059_v34 }
 0x1be   : > { %v750_v37 = vadd.f32 %v749_v36, %v1894_v57  ;;  %v751_v38 = vpop.f32.mrb[9].mxu1  ;;  %619 = vst.msk [vmem:[%s1917_s20 + $0x14] sm:$0xf] %vm613_vm2, %v1057_v35  ;;  %v1089_v41 = vpop.f32.mrb[8].mxu0 }
 0x1bf   : > { %v752_v39 = vadd.f32 %v751_v38, %v1896_v58  ;;  %v753_v40 = vpop.f32.mrb[10].mxu1  ;;  %v563_v43 = vadd.f32 %v1089_v41, %v1899_v60  ;;  %v554_v45 = vpop.f32.mrb[9].mxu0 }
 0x1c0   : > { %789 = vst [vmem:[%s1903_s21 + $0x60] sm:$0xff] %v750_v37  ;;  %v754_v42 = vadd.f32 %v753_v40, %v1894_v57  ;;  %v755_v44 = vpop.f32.mrb[11].mxu1  ;;  %v555_v47 = vadd.f32 %v1899_v60, %v554_v45  ;;  %v1090_v48 = vpop.f32.mrb[10].mxu0 }
 0x1c1   : > { %790 = vst.msk [vmem:[%s1903_s21 + $0x68] sm:$0xff] %vm777_vm1, %v752_v39  ;;  %v756_v46 = vadd.f32 %v755_v44, %v1896_v58  ;;  %v1062_v49 = vpack.c.bf16 %v563_v43, %v563_v43  ;;  %v557_v50 = vpop.f32.mrb[11].mxu0 }
 0x1c2   : > { %791 = vst [vmem:[%s1903_s21 + $0x70] sm:$0xff] %v754_v42  ;;  %v1060_v51 = vpack.c.bf16 %v555_v47, %v555_v47  ;;  %v558_v52 = vadd.f32 %v1899_v60, %v557_v50 }
 0x1c3   : > { %792 = vst.msk [vmem:[%s1903_s21 + $0x78] sm:$0xff] %vm777_vm1, %v756_v46 }
 0x1c4   : > { %624 = vst.msk [vmem:[%s1917_s20 + $0x28] sm:$0xf] %vm613_vm2, %v1062_v49  ;;  %622 = vst.msk [vmem:[%s1917_s20 + $0x20] sm:$0xf] %vm613_vm2, %v1060_v51  ;;  %v1061_v53 = vpack.c.bf16 %v558_v52, %v558_v52 }
 0x1c5   : > { %v759_v54 = vpop.f32.mrb[12].mxu1 }
 0x1c6   : > { %v760_v55 = vadd.f32 %v759_v54, %v1894_v57  ;;  %v761_v56 = vpop.f32.mrb[13].mxu1  ;;  %623 = vst.msk [vmem:[%s1917_s20 + $0x24] sm:$0xf] %vm613_vm2, %v1061_v53  ;;  %v719_v61 = vpop.f32.mrb[12].mxu0 }
 0x1c7   : > { %v762_v59 = vadd.f32 %v761_v56, %v1896_v58  ;;  %v763_v60 = vpop.f32.mrb[14].mxu1  ;;  %v720_v63 = vadd.f32 %v719_v61, %v1894_v57  ;;  %v721_v1 = vpop.f32.mrb[13].mxu0 }
 0x1c8   : > { %793 = vst [vmem:[%s1903_s21 + $0x80] sm:$0xff] %v760_v55  ;;  %v764_v62 = vadd.f32 %v763_v60, %v1894_v57  ;;  %v765_v0 = vpop.f32.mrb[15].mxu1 }
 0x1c9   : > { %1399 = shalt.err (!%p1396_p8)
}
 0x1ca   : > { %s1400_s2 = scalar_lea.hbm %s1969_s17, 704  ;;  %s1404_s30 = scalar_lea.hbm %s2083_s6, 1408 }
 0x1cb   : > { %p1401_p11 = scmp.ne.s32.totalorder %s1969_s17, %s1400_s2  ;;  %p1405_p2 = scmp.lt.u32.totalorder %s1969_s17, %s2083_s6 }
 0x1cc   : > { %p1406_p1 = scmp.lt.u32.totalorder %s1404_s30, %s1400_s2  ;;  %p1408_p0 = scmp.lt.u32.totalorder %s1400_s2, %s1969_s17 }
 0x1cd   : > { %p1402_p7 = pnand %p1401_p11, %p1722_p10 }
 0x1ce   : > { %p1407_p13 = por %p1406_p1, %p1405_p2 }
 0x1cf   : > { %p1403_p12 = pneg %p1402_p7 }
 0x1d0   : > { %p1409_p4 = por %p1408_p0, %p1407_p13 }
 0x1d2   : > { %p1410_p6 = pnand %p1409_p4, %p1403_p12 }
 0x1d4   : > { %1413 = shalt.err (!%p1410_p6)
}
 0x1d5   : > { %s1514_s11 = smov 64   ;;  %s1515_s16 = smov 4   ;;  %794 = vst.msk [vmem:[%s1903_s21 + $0x88] sm:$0xff] %vm777_vm1, %v762_v59  ;;  %v766_v2 = vadd.f32 %v765_v0, %v1896_v58  ;;  %v722_v3 = vadd.f32 %v721_v1, %v1896_v58  ;;  %v723_v4 = vpop.f32.mrb[14].mxu0  ;;  %795 = vst [vmem:[%s1903_s21 + $0x90] sm:$0xff] %v764_v62  ;;  %v769_v8 = vpop.f32.mrb[16].mxu1 }
 0x1d6   : > { %1120 = dma.vmem_to_hbm [thread:$0]  (%p1722_p10), %s1971_s29, 704, %s1969_s17, %s800_s8, %s1514_s11, %s1514_s11, %s1515_s16   ;;  %v724_v5 = vadd.f32 %v723_v4, %v1894_v57  ;;  %v725_v6 = vpop.f32.mrb[15].mxu0  ;;  %v770_v9 = vadd.f32 %v769_v8, %v1894_v57  ;;  %v771_v10 = vpop.f32.mrb[17].mxu1 }
 0x1d7   : > { %776 = vst [vmem:[%s1903_s21] sm:$0xff] %v720_v63  ;;  %s1066_s0 = smul.u32 2816, %s1580_s28  ;;  %796 = vst.msk [vmem:[%s1903_s21 + $0x98] sm:$0xff] %vm777_vm1, %v766_v2  ;;  %v726_v7 = vadd.f32 %v725_v6, %v1896_v58  ;;  %s835_s29 = sshll.u32 %s1903_s21, 4  ;;  %v772_v11 = vadd.f32 %v771_v10, %v1896_v58  ;;  %v773_v12 = vpop.f32.mrb[18].mxu1  ;;  %s2029_s29 = int_to_ptr.vmem [resolvable:$true] %s835_s29 }
 0x1d8   : > { %778 = vst.msk [vmem:[%s1903_s21 + $0x8] sm:$0xff] %vm777_vm1, %v722_v3  ;;  %779 = vst [vmem:[%s1903_s21 + $0x10] sm:$0xff] %v724_v5  ;;  %v774_v13 = vpop.f32.mrb[19].mxu1  ;;  %s805_s10 = scalar_lea.sflag [#allocation15], %s1824_s3  ;;  %s1414_s13 = scalar_lea.vmem %s2029_s29, 2816 }
 0x1d9   : > { %780 = vst.msk [vmem:[%s1903_s21 + $0x18] sm:$0xff] %vm777_vm1, %v726_v7  ;;  %s2027_s28 = scalar_lea.hbm %s2084_s7, %s1066_s0  ;;  %797 = vst [vmem:[%s1903_s21 + $0xa0] sm:$0xff] %v770_v9  ;;  %p1415_p3 = scmp.ne.s32.totalorder %s2029_s29, %s1414_s13 }
 0x1da   : > { %798 = vst.msk [vmem:[%s1903_s21 + $0xa8] sm:$0xff] %vm777_vm1, %v772_v11  ;;  %s1516_s12 = smov [#allocation14]  }
 0x1db   : > { %p1416_p5 = pnand %p1415_p3, %p1722_p10  ;;  %s1418_s15 = sshll.u32 %s1516_s12, 4  ;;  %s1419_s15 = int_to_ptr.vmem [resolvable:$false] %s1418_s15 }
 0x1dc   : > { %s1420_s2 = scalar_lea.vmem %s1419_s15, 5632  ;;  %p1421_p8 = scmp.lt.s32.totalorder %s2029_s29, %s1419_s15 }
 0x1dd   : > { %p1417_p9 = pneg %p1416_p5  ;;  %p1422_p11 = scmp.lt.s32.totalorder %s1420_s2, %s1414_s13 }
 0x1df   : > { %p1423_p7 = por %p1422_p11, %p1421_p8 }
 0x1e1   : > { %p1424_p12 = pnand %p1423_p7, %p1417_p9 }
 0x1e3   : > { %1427 = shalt.err (!%p1424_p12)
}
 0x1e4   : > { %s1428_s21 = scalar_lea.hbm %s2027_s28, 2816  ;;  %s1432_s30 = scalar_lea.hbm %s2084_s7, 5632 }
 0x1e5   : > { %p1429_p2 = scmp.ne.s32.totalorder %s2027_s28, %s1428_s21  ;;  %p1433_p0 = scmp.lt.u32.totalorder %s2027_s28, %s2084_s7 }
 0x1e6   : > { %p1434_p4 = scmp.lt.u32.totalorder %s1432_s30, %s1428_s21  ;;  %p1436_p3 = scmp.lt.u32.totalorder %s1428_s21, %s2027_s28 }
 0x1e7   : > { %p1430_p1 = pnand %p1429_p2, %p1722_p10 }
 0x1e8   : > { %p1435_p6 = por %p1434_p4, %p1433_p0 }
 0x1e9   : > { %p1431_p13 = pneg %p1430_p1 }
 0x1ea   : > { %p1437_p5 = por %p1436_p3, %p1435_p6 }
 0x1ec   : > { %p1438_p9 = pnand %p1437_p5, %p1431_p13 }
 0x1ee   : > { %1441 = shalt.err (!%p1438_p9)
}
 0x1ef   : > { %s1517_s11 = smov 256   ;;  %s1518_s16 = smov 16  }
 0x1f0   : > { %1121 = dma.vmem_to_hbm [thread:$0]  (%p1722_p10), %s2029_s29, 2816, %s2027_s28, %s805_s10, %s1517_s11, %s1517_s11, %s1518_s16  }
 0x1f1 PF: > { %s2121_s0 = sld [smem:[#allocation23_spill]]  ;;  %s850_s17 = sand.u32 1, %s1488_s24  }
 0x1f2   : > { %p2123_p11 = scmp.ge.s32.totalorder %s1500_s27, 2  ;;  %s851_s8 = scalar_lea.sflag [#allocation4], %s850_s17 }
 0x1f7   : > { %p2122_p8 = scmp.ne.s32.totalorder %s2121_s0, 0 }
 0x1f9   : > { %p1145_p7 = pnand %p2123_p11, %p2122_p8 }
 0x1fb   : > { %1479 = dma.done.wait (!%p1145_p7), %s851_s8, 704  }
 0x1fc   : > { %1481 = vsyncadd (!%p1145_p7), %s851_s8, 4294966592  ;;  %s860_s13 = scalar_lea.sflag [#allocation15], %s850_s17 }
 0x1fd   : > { %1483 = dma.done.wait (!%p1145_p7), %s860_s13, 2816  }
 0x1fe   : > { %1485 = vsyncadd (!%p1145_p7), %s860_s13, 4294964480  ;;  %p29_p10 = scmp.ge.s32.totalorder %s1712_s22, 4   ;;  %s2124_s24 = smov %s1492_s25 }
 0x1ff   : > { %s2125_s25 = smov %s1496_s26  ;;  %s2126_s26 = smov %s1728_s19 }
 0x200   : > { %s2127_s27 = smov %s1712_s22  ;;  %31 = sbr.rel (!%p29_p10) target bundleno = 15 (0xf), region = 135 }
 0x207   :  { %865 = vsyncpa [#allocation3], 1 }
 0x208   :  { %867 = vsyncpa [#allocation3 + $0x1], 1 }
 0x209   :  { %868 = vsyncpa [#allocation6], 1 }
 0x20a   :  { %870 = vsyncpa [#allocation6 + $0x1], 1 }
 0x20b   :  { %871 = vsyncpa [#allocation9], 1 }
 0x20c   :  { %872 = vsyncpa [#allocation12], 1 }
 0x20d   :  { %873 = vsyncpa [#allocation4], 1 }
 0x20e   :  { %875 = vsyncpa [#allocation4 + $0x1], 1 }
 0x20f   :  { %876 = vsyncpa [#allocation15], 1 }
 0x210   :  { %878 = vsyncpa [#allocation15 + $0x1], 1 }

</bundles_post_ra>
